<compile_context>
chip_gen: v7x
topology: tpu7x:2x2x1
jax: 0.10.0
libtpu: 0.0.40
codegen_flags: <defaults>
</compile_context>

<pallas_src>
import functools
import math

import jax
import jax.numpy as jnp
from jax import lax
from jax.experimental import pallas as pl
from jax.experimental.pallas import tpu as pltpu

_LANES = 128
_SUBLANES = 8
_CHUNK_ROWS = 512                       # in-kernel accumulation chunk (mult. of 32)
_TARGET_TILE_BYTES = 4 * 1024 * 1024    # ~4 MiB per input per grid step
_VMEM_LIMIT_BYTES = 32 * 1024 * 1024    # covers 2 inputs x 2 buffers x 4 MiB + temps
_FAST_PATH_MAX_ELEMS = 1 << 16          # below this, fused XLA beats a kernel launch


def _round_up(x, m):
    return ((x + m - 1) // m) * m


def _sublane_packing(dtype):
    # Sub-32-bit dtypes pack along sublanes: bf16 -> 16 rows/vreg, int8/fp8 -> 32.
    itemsize = jnp.dtype(dtype).itemsize
    return max(_SUBLANES, (_SUBLANES * 4) // itemsize)


def _partial_sum_kernel(pred_ref, targ_ref, out_ref, *, loss_type, tile_rows,
                        chunk_rows, valid_rows, mask_tail):
    """Reduce one (tile_rows, 128) loss tile into an (8, 128) partial-sum block."""
    num_chunks = tile_rows // chunk_rows
    row_base = pl.program_id(0) * tile_rows

    def body(c, acc):
        start = pl.multiple_of(c * chunk_rows, chunk_rows)
        p = pred_ref[pl.ds(start, chunk_rows), :].astype(jnp.float32)
        t = targ_ref[pl.ds(start, chunk_rows), :].astype(jnp.float32)
        d = p - t
        loss = jnp.abs(d) if loss_type == "l1" else d * d
        if mask_tail:
            # Rows past the true array extent hold unspecified block-padding
            # data; use a select (not a multiply) so NaN/Inf garbage cannot leak.
            local_row = lax.broadcasted_iota(jnp.int32, (chunk_rows, 1), 0)
            loss = jnp.where(row_base + start + local_row < valid_rows, loss, 0.0)
        # (chunk,128) -> (chunk//8, 8, 128): keeps (8,128) vreg tiles intact so
        # the axis-0 reduce is pure VPU adds (no cross-lane XLU traffic).
        return acc + jnp.sum(loss.reshape(-1, _SUBLANES, _LANES), axis=0)

    acc0 = jnp.zeros((_SUBLANES, _LANES), jnp.float32)
    acc = lax.fori_loop(0, num_chunks, body, acc0, unroll=min(4, num_chunks))
    out_ref[...] = acc


def weighted_loss(predict, target, weighted=1.0, loss_type="l2", use_pallas=None):
    """JAX/Pallas version of WeightedLoss.forward(predict, target, weighted)."""
    assert predict.shape == target.shape
    assert loss_type in ("l1", "l2")
    total = math.prod(predict.shape)
    assert total > 0

    def _reference(p, t):
        d = p.astype(jnp.float32) - t.astype(jnp.float32)
        loss = jnp.abs(d) if loss_type == "l1" else d * d
        return jnp.mean(loss * weighted)

    # Scalar `weighted` => (loss * w).mean() == w * loss.mean(); tensor weights
    # keep exact module semantics on the fused-XLA path.
    scalar_weight = jnp.size(weighted) == 1
    if use_pallas is None:
        use_pallas = scalar_weight and total >= _FAST_PATH_MAX_ELEMS
    if (not use_pallas) or (not scalar_weight):
        return _reference(predict, target)

    itemsize = max(jnp.dtype(predict.dtype).itemsize, jnp.dtype(target.dtype).itemsize)
    packing = max(_sublane_packing(predict.dtype), _sublane_packing(target.dtype))

    rows = -(-total // _LANES)                       # lane-dense row count
    padded_rows = _round_up(rows, packing)           # only up to a full row group

    if padded_rows <= _CHUNK_ROWS:
        tile_rows = padded_rows                      # single small block, no mask
        chunk_rows = padded_rows
    else:
        chunk_rows = _CHUNK_ROWS
        target_rows = max(
            chunk_rows,
            ((_TARGET_TILE_BYTES // (_LANES * itemsize)) // chunk_rows) * chunk_rows,
        )
        tile_rows = min(target_rows, _round_up(padded_rows, chunk_rows))
    num_blocks = -(-padded_rows // tile_rows)
    mask_tail = (num_blocks * tile_rows != padded_rows)

    padded_total = padded_rows * _LANES

    def _to_slab(x):
        flat = x.reshape(-1)
        if padded_total != total:
            # Minimal zero pad (only to a (packing,128) row-group boundary);
            # padded diffs are 0 for both L1 and L2 so they add nothing.
            flat = jnp.pad(flat, (0, padded_total - total))
        return flat.reshape(padded_rows, _LANES)

    pred2d = _to_slab(predict)
    targ2d = _to_slab(target)

    kernel = functools.partial(
        _partial_sum_kernel, loss_type=loss_type, tile_rows=tile_rows,
        chunk_rows=chunk_rows, valid_rows=padded_rows, mask_tail=mask_tail)

    bytes_accessed = (total * (jnp.dtype(predict.dtype).itemsize
                               + jnp.dtype(target.dtype).itemsize)
                      + num_blocks * _SUBLANES * _LANES * 4)

    partials = pl.pallas_call(
        kernel,
        out_shape=jax.ShapeDtypeStruct((num_blocks * _SUBLANES, _LANES), jnp.float32),
        grid=(num_blocks,),
        in_specs=[
            pl.BlockSpec((tile_rows, _LANES), lambda i: (i, 0)),
            pl.BlockSpec((tile_rows, _LANES), lambda i: (i, 0)),
        ],
        out_specs=pl.BlockSpec((_SUBLANES, _LANES), lambda i: (i, 0)),
        compiler_params=pltpu.CompilerParams(
            dimension_semantics=("parallel",),
            vmem_limit_bytes=_VMEM_LIMIT_BYTES,
        ),
        cost_estimate=pl.CostEstimate(
            flops=3 * total, transcendentals=0, bytes_accessed=int(bytes_accessed)),
    )(pred2d, targ2d)

    # Tiny final reduction (num_blocks * 8 * 128 f32) + mean scale in XLA.
    loss_mean = jnp.sum(partials) / jnp.float32(total)
    return loss_mean * weighted


if __name__ == "__main__":
    # WeightedLoss has no parameters (__init__ creates none), so nothing to init.
    key = jax.random.PRNGKey(0)
    k1, k2, k3, k4 = jax.random.split(key, 4)

    # Module-native small shape: predict/target are [batch_size, action_dim].
    batch, action_dim = 8, 32
    predict = jax.random.normal(k1, (batch, action_dim), dtype=jnp.float32)
    target = jax.random.normal(k2, (batch, action_dim), dtype=jnp.float32)

    # L2 and L1 through the Pallas path (forced; auto mode would use the fused
    # fast path at this size).
    out_l2 = jax.block_until_ready(weighted_loss(predict, target, 1.0, "l2", use_pallas=True))
    ref_l2 = jnp.mean((predict - target) ** 2)
    out_l1 = jax.block_until_ready(weighted_loss(predict, target, 1.0, "l1", use_pallas=True))
    ref_l1 = jnp.mean(jnp.abs(predict - target))
    assert jnp.allclose(out_l2, ref_l2, rtol=1e-5, atol=1e-6), (out_l2, ref_l2)
    assert jnp.allclose(out_l1, ref_l1, rtol=1e-5, atol=1e-6), (out_l1, ref_l1)

    # Larger shape (auto-selects the kernel): exercises the chunked fori_loop
    # accumulation and the in-kernel tail masking of a partial last tile.
    b2, a2 = 400, 192
    p2 = jax.random.normal(k3, (b2, a2), dtype=jnp.float32)
    t2 = jax.random.normal(k4, (b2, a2), dtype=jnp.float32)
    out_big = jax.block_until_ready(weighted_loss(p2, t2, 0.5, "l2"))
    ref_big = 0.5 * jnp.mean((p2 - t2) ** 2)
    assert jnp.allclose(out_big, ref_big, rtol=2e-5, atol=1e-6), (out_big, ref_big)

    # bf16 path: 16-row sublane packing, padded tail, f32 accumulation.
    p_bf = predict.astype(jnp.bfloat16)
    t_bf = target.astype(jnp.bfloat16)
    out_bf = jax.block_until_ready(weighted_loss(p_bf, t_bf, 1.0, "l2", use_pallas=True))
    ref_bf = jnp.mean((p_bf.astype(jnp.float32) - t_bf.astype(jnp.float32)) ** 2)
    assert jnp.allclose(out_bf, ref_bf, rtol=1e-2, atol=1e-3), (out_bf, ref_bf)

    # Auto small-input fast path agrees with the kernel path.
    out_fast = jax.block_until_ready(weighted_loss(predict, target, 1.0, "l2"))
    assert jnp.allclose(out_fast, out_l2, rtol=1e-5, atol=1e-6), (out_fast, out_l2)

    print("KERNEL_OK")
</pallas_src>

<mosaic_0001>
module attributes {stable_mosaic.version = 11 : i64} {
  func.func @_partial_sum_kernel(%arg0: i32, %arg1: memref<8x128xf32, #tpu.memory_space<vmem>>, %arg2: memref<8x128xf32, #tpu.memory_space<vmem>>, %arg3: memref<8x128xf32, #tpu.memory_space<vmem>>) attributes {dimension_semantics = [#tpu.dimension_semantics<parallel>], iteration_bounds = array<i64: 1>, scalar_prefetch = 0 : i64, scratch_operands = 0 : i64, tpu.core_type = #tpu.core_type<tc>, window_params = [{transform_indices = @transform_0, window_bounds = array<i64: 8, 128>}, {transform_indices = @transform_1, window_bounds = array<i64: 8, 128>}, {transform_indices = @transform_2, window_bounds = array<i64: 8, 128>}]} {
    %cst = arith.constant 0.000000e+00 : f32
    %0 = vector.broadcast %cst : f32 to vector<8x128xf32>
    %c0_i32 = arith.constant 0 : i32
    %c8_i32 = arith.constant 8 : i32
    %1 = arith.muli %c0_i32, %c8_i32 : i32
    %2 = tpu.assume_multiple %1, 8 : i32
    %3 = arith.index_cast %2 : i32 to index
    %c0 = arith.constant 0 : index
    %4 = vector.load %arg1[%3, %c0] : memref<8x128xf32, #tpu.memory_space<vmem>>, vector<8x128xf32>
    %5 = arith.index_cast %2 : i32 to index
    %c0_0 = arith.constant 0 : index
    %6 = vector.load %arg2[%5, %c0_0] : memref<8x128xf32, #tpu.memory_space<vmem>>, vector<8x128xf32>
    %7 = arith.subf %4, %6 : vector<8x128xf32>
    %8 = arith.mulf %7, %7 : vector<8x128xf32>
    %9 = vector.shape_cast %8 : vector<8x128xf32> to vector<1x8x128xf32>
    %cst_1 = arith.constant dense<0.000000e+00> : vector<8x128xf32>
    %10 = vector.multi_reduction <add>, %9, %cst_1 [0] : vector<1x8x128xf32> to vector<8x128xf32>
    %11 = arith.addf %0, %10 : vector<8x128xf32>
    %c1_i32 = arith.constant 1 : i32
    %c0_2 = arith.constant 0 : index
    %c0_3 = arith.constant 0 : index
    %12 = vector.load %arg3[%c0_2, %c0_3] : memref<8x128xf32, #tpu.memory_space<vmem>>, vector<8x128xf32>
    tpu.vector_store %arg3[%c0_2, %c0_3], %11 {strides = array<i32>} : memref<8x128xf32, #tpu.memory_space<vmem>>, vector<8x128xf32>,
    return
  }
  func.func @transform_0(%arg0: i32) -> (i32, i32) {
    %c0_i32 = arith.constant 0 : i32
    %c0_i32_0 = arith.constant 0 : i32
    return %arg0, %c0_i32 : i32, i32
  }
  func.func @transform_1(%arg0: i32) -> (i32, i32) {
    %c0_i32 = arith.constant 0 : i32
    %c0_i32_0 = arith.constant 0 : i32
    return %arg0, %c0_i32 : i32, i32
  }
  func.func @transform_2(%arg0: i32) -> (i32, i32) {
    %c0_i32 = arith.constant 0 : i32
    %c0_i32_0 = arith.constant 0 : i32
    return %arg0, %c0_i32 : i32, i32
  }
}

</mosaic_0001>

<bundles_post_ra>
// kernel: tpu_custom_call.1
= control target key start
LH: loop header
LB: loop body
LE: loop exit
PB: predicated region body
PF: predicated region fallthrough
CT: control target
= control target key end

     0   :  { %7 = vsyncpa [#allocation3], 0  ;;  %s188_s0 = inlined_call_operand.hbm [shape: f32[8,128], index: 0, kind: input, shape index: {}]   ;;  %s189_s1 = inlined_call_operand.hbm [shape: f32[8,128], index: 1, kind: input, shape index: {}]   ;;  %s190_s2 = inlined_call_operand.hbm [shape: f32[8,128], index: 2, kind: output, shape index: {}]  }
   0x1   :  { %8 = vsyncpa [#allocation6], 0 }
   0x2   :  { %9 = vsyncpa [#allocation4], 0  ;;  %s134_s9 = smov [#allocation2]   ;;  %s135_s11 = smov [#allocation5]  }
   0x3   :  { %s16_s10 = sshll.u32 %s134_s9, 4  ;;  %s26_s12 = sshll.u32 %s135_s11, 4  ;;  %s17_s10 = int_to_ptr.vmem [resolvable:$true] %s16_s10  ;;  %s27_s12 = int_to_ptr.vmem [resolvable:$true] %s26_s12 }
   0x4   :  { %s62_s15 = scalar_lea.hbm %s188_s0, 128 }
   0x5   :  { %p63_p0 = scmp.ne.s32.totalorder %s188_s0, %s62_s15  ;;  %p66_p1 = scmp.lt.u32.totalorder %s62_s15, %s188_s0 }
   0x7   :  { %p68_p2 = pnand %p66_p1, %p63_p0 }
   0x9   :  { %71 = shalt.err (!%p68_p2)
}
   0xa   :  { %s72_s20 = scalar_lea.vmem %s17_s10, 128  ;;  %p77_p4 = scmp.lt.s32.totalorder %s17_s10, %s17_s10 }
   0xb   :  { %p73_p3 = scmp.ne.s32.totalorder %s17_s10, %s72_s20  ;;  %p78_p5 = scmp.lt.s32.totalorder %s72_s20, %s72_s20 }
   0xd   :  { %p79_p6 = por %p78_p5, %p77_p4 }
   0xf   :  { %p80_p7 = pnand %p79_p6, %p73_p3 }
  0x11   :  { %83 = shalt.err (!%p80_p7)
}
  0x12   :  { %19 = dma.hbm_to_vmem [thread:$0]  %s188_s0, 128, %s17_s10, [#allocation3]  }
  0x13   :  { %s84_s25 = scalar_lea.hbm %s189_s1, 128 }
  0x14   :  { %p85_p8 = scmp.ne.s32.totalorder %s189_s1, %s84_s25  ;;  %p88_p9 = scmp.lt.u32.totalorder %s84_s25, %s189_s1 }
  0x16   :  { %p90_p10 = pnand %p88_p9, %p85_p8 }
  0x18   :  { %93 = shalt.err (!%p90_p10)
}
  0x19   :  { %s94_s30 = scalar_lea.vmem %s27_s12, 128  ;;  %p99_p12 = scmp.lt.s32.totalorder %s27_s12, %s27_s12 }
  0x1a   :  { %p95_p11 = scmp.ne.s32.totalorder %s27_s12, %s94_s30  ;;  %p100_p13 = scmp.lt.s32.totalorder %s94_s30, %s94_s30 }
  0x1c   :  { %p101_p0 = por %p100_p13, %p99_p12 }
  0x1e   :  { %p102_p1 = pnand %p101_p0, %p95_p11 }
  0x20   :  { %105 = shalt.err (!%p102_p1)
}
  0x21   :  { %29 = dma.hbm_to_vmem [thread:$0]  %s189_s1, 128, %s27_s12, [#allocation6]  }
  0x22   :  { %128 = dma.done.wait [#allocation3], 128  }
  0x23   :  { %129 = vsyncadd [#allocation3], 4294967168 }
  0x24   :  { %130 = dma.done.wait [#allocation6], 128  }
  0x25   :  { %131 = vsyncadd [#allocation6], 4294967168  ;;  %v36_v0 = vld [vmem:[#allocation2] sm:$0xff]  ;;  %v37_v1 = vld [vmem:[#allocation5] sm:$0xff]  ;;  %s136_s4 = smov [#allocation7]  }
  0x26   :  { %s49_s5 = sshll.u32 %s136_s4, 4  ;;  %v38_v2 = vsub.f32 %v36_v0, %v37_v1  ;;  %s50_s5 = int_to_ptr.vmem [resolvable:$true] %s49_s5 }
  0x27   :  { %s106_s6 = scalar_lea.vmem %s50_s5, 128  ;;  %p111_p3 = scmp.lt.s32.totalorder %s50_s5, %s50_s5 }
  0x28   :  { %v39_v3 = vmul.f32 %v38_v2, %v38_v2  ;;  %p107_p2 = scmp.ne.s32.totalorder %s50_s5, %s106_s6  ;;  %p112_p4 = scmp.lt.s32.totalorder %s106_s6, %s106_s6 }
  0x2a   :  { %42 = vst [vmem:[#allocation7] sm:$0xff] %v39_v3  ;;  %p113_p5 = por %p112_p4, %p111_p3 }
  0x2c   :  { %p114_p6 = pnand %p113_p5, %p107_p2 }
  0x2e   :  { %117 = shalt.err (!%p114_p6)
}
  0x2f   :  { %s118_s8 = scalar_lea.hbm %s190_s2, 128 }
  0x30   :  { %p119_p7 = scmp.ne.s32.totalorder %s190_s2, %s118_s8  ;;  %p122_p8 = scmp.lt.u32.totalorder %s118_s8, %s190_s2 }
  0x32   :  { %p124_p9 = pnand %p122_p8, %p119_p7 }
  0x34   :  { %127 = shalt.err (!%p124_p9)
}
  0x35   :  { %52 = dma.vmem_to_hbm [thread:$0]  %s50_s5, 128, %s190_s2, [#allocation4]  }
  0x36   :  { %132 = dma.done.wait [#allocation4], 128  }
  0x37   :  { %133 = vsyncadd [#allocation4], 4294967168 }
  0x38   :  { %56 = vsyncpa [#allocation3], 1 }
  0x39   :  { %57 = vsyncpa [#allocation6], 1 }
  0x3a   :  { %58 = vsyncpa [#allocation4], 1 }

</bundles_post_ra>
